<compile_context>
chip_gen: v7x
topology: tpu7x:2x2x1
jax: 0.10.0
libtpu: 0.0.40
codegen_flags: <defaults>
</compile_context>

<pallas_src>
import jax
import jax.numpy as jnp
from jax.experimental import pallas as pl
from jax.experimental.pallas import tpu as pltpu


def _dma_copy_kernel(x_hbm_ref, o_hbm_ref, sem):
    # Single HBM->HBM DMA: stream the whole selected tensor into the fresh
    # output buffer. No VMEM staging, no grid, no per-step overhead.
    cp = pltpu.make_async_copy(x_hbm_ref, o_hbm_ref, sem)
    cp.start()
    cp.wait()


def _pallas_identity(x: jax.Array) -> jax.Array:
    """Materialize `x` into a fresh HBM buffer via one direct DMA copy."""
    if x.size == 0:
        # Nothing to copy; empty arrays are returned as-is.
        return x

    nbytes = int(x.size) * x.dtype.itemsize
    return pl.pallas_call(
        _dma_copy_kernel,
        out_shape=jax.ShapeDtypeStruct(x.shape, x.dtype),
        in_specs=[pl.BlockSpec(memory_space=pl.ANY)],
        out_specs=pl.BlockSpec(memory_space=pl.ANY),
        scratch_shapes=[pltpu.SemaphoreType.DMA(())],
        compiler_params=pltpu.CompilerParams(has_side_effects=True),
        cost_estimate=pl.CostEstimate(
            flops=0, transcendentals=0, bytes_accessed=2 * nbytes),
    )(x)


class GetElem:
    """JAX/Pallas equivalent of the PyTorch GetElem module.

    By default this is a pure static tuple selection (no device work) — the
    faithful and fastest translation of the PyTorch forward. Pass
    `materialize=True` to force the selected tensor through the Pallas
    HBM->HBM DMA copy kernel (fresh output buffer).
    """

    def __init__(self, idx: int, materialize: bool = False):
        self.idx = idx
        self.materialize = materialize

    def __call__(self, lst):
        # TODO(synk): tuple indexing is a host-level static op with no device
        # compute; only the optional materialization runs in Pallas.
        selected = lst[self.idx]
        if not self.materialize:
            return selected
        return _pallas_identity(selected)


if __name__ == "__main__":
    key = jax.random.PRNGKey(0)
    k0, k1, k2 = jax.random.split(key, 3)

    # Small NCHW-style tensors making up the TupleIM.data tuple.
    a = jax.random.normal(k0, (2, 4, 16, 16), dtype=jnp.float32)   # element 0
    b = jax.random.normal(k1, (2, 8, 8, 8), dtype=jnp.float32)     # element 1
    c = jax.random.normal(k2, (2, 4, 16, 16), dtype=jnp.float32)   # element 2
    tuple_data = (a, b, c)

    idx = 1

    # Default (recommended) path: zero-copy static selection, no kernel.
    out_fast = GetElem(idx)(tuple_data)
    out_fast = jax.block_until_ready(out_fast)
    assert out_fast.shape == tuple_data[idx].shape
    assert out_fast.dtype == tuple_data[idx].dtype
    assert bool(jnp.array_equal(out_fast, tuple_data[idx]))

    # Materializing path: exercises the HBM->HBM DMA copy kernel.
    out_kernel = GetElem(idx, materialize=True)(tuple_data)
    out_kernel = jax.block_until_ready(out_kernel)
    assert out_kernel.shape == tuple_data[idx].shape
    assert out_kernel.dtype == tuple_data[idx].dtype
    assert bool(jnp.array_equal(out_kernel, tuple_data[idx]))

    # Also exercise the kernel on a different element (different shape) to
    # confirm the DMA path is shape-agnostic (no lane-dense reshape needed).
    out_kernel0 = GetElem(0, materialize=True)(tuple_data)
    out_kernel0 = jax.block_until_ready(out_kernel0)
    assert bool(jnp.array_equal(out_kernel0, tuple_data[0]))

    # Zero-size guard.
    empty = jnp.zeros((0, 4), dtype=jnp.float32)
    out_empty = GetElem(0, materialize=True)((empty,))
    out_empty = jax.block_until_ready(out_empty)
    assert out_empty.shape == (0, 4)

    print("KERNEL_OK")
</pallas_src>

<mosaic_0001>
module attributes {stable_mosaic.version = 11 : i64} {
  func.func @_dma_copy_kernel(%arg0: memref<2x8x8x8xf32, #tpu.memory_space<any>>, %arg1: memref<2x8x8x8xf32, #tpu.memory_space<any>>, %arg2: memref<!tpu.dma_semaphore, #tpu.memory_space<semaphore_mem>>) attributes {dimension_semantics = [], scalar_prefetch = 0 : i64, scratch_operands = 1 : i64, tpu.core_type = #tpu.core_type<tc>} {
    tpu.enqueue_dma source(%arg0 : memref<2x8x8x8xf32, #tpu.memory_space<any>>) target(%arg1 : memref<2x8x8x8xf32, #tpu.memory_space<any>>) target_semaphore(%arg2 : memref<!tpu.dma_semaphore, #tpu.memory_space<semaphore_mem>>)
    tpu.wait_dma2 semaphore(%arg2 : memref<!tpu.dma_semaphore, #tpu.memory_space<semaphore_mem>>) src(%arg0 : memref<2x8x8x8xf32, #tpu.memory_space<any>>) dst(%arg1 : memref<2x8x8x8xf32, #tpu.memory_space<any>>)
    return
  }
}

</mosaic_0001>

<bundles_post_ra>
// kernel: tpu_custom_call.1
= control target key start
LH: loop header
LB: loop body
LE: loop exit
PB: predicated region body
PF: predicated region fallthrough
CT: control target
= control target key end

     0   :  { %s36_s6 = smov [#allocation2]   ;;  %s37_s7 = smov [#allocation3]   ;;  %s55_s0 = inlined_call_operand.hbm [shape: f32[2,8,8,8], index: 0, kind: input, shape index: {}]   ;;  %s56_s1 = inlined_call_operand.hbm [shape: f32[2,8,8,8], index: 1, kind: output, shape index: {}]  }
   0x1   :  { %s38_s8 = smov 0  }
   0x2   :  { %18 = dma.general %s55_s0, 2048, %s56_s1, %s36_s6, %s37_s7, [#allocation4], %s38_s8, 0  }
   0x3   :  { %34 = dma.done.wait [#allocation2], 2048 }
   0x4   :  { %35 = vsyncadd [#allocation2], 4294965248 }
   0x5   :  { %24 = vsyncmov [#allocation2] }
   0x8   :  { %s25_s13 = vpop.sfrf %24 }
   0x9   :  { %p30_p0 = scmp.ne.s32.totalorder %s25_s13, 0 }
   0xb   :  { %29 = shalt.err (%p30_p0)  }

</bundles_post_ra>
